<compile_context>
chip_gen: v6e
topology: v6e:2x2x1
jax: 0.10.0
libtpu: 0.0.40
codegen_flags: <defaults>
</compile_context>

<pallas_src>
import jax
import jax.numpy as jnp
from jax.experimental import pallas as pl
from jax.experimental.pallas import tpu as pltpu

LANE = 128
NUM_CLASSES = 10
IN_DIM = 1 * 28 * 28
NEG_BIG = -1e30  # padded-logit bias: exp(NEG_BIG - m) == 0, never wins the max


def _round_up(x, m):
    return ((x + m - 1) // m) * m


def mlp_logsoftmax_kernel(x_ref, w1_ref, b1_ref, w2_ref, b2_ref, w3_ref, b3_ref, o_ref):
    # x_ref: (TB, 784) f32; w1: (784, Hp) bf16; b1: (1, Hp) f32; w2: (Hp, Hp) bf16;
    # b2: (1, Hp) f32; w3: (Hp, Np) bf16; b3: (1, Np) f32 (padded cols = -1e30);
    # o_ref: (TB, Np) bf16 (lane-dense, Np = 128).

    # Fused cast: f32 tile -> bf16 MXU feed (no standalone XLA cast pass over x in HBM).
    x = x_ref[...].astype(jnp.bfloat16)

    # Linear 1 + ReLU  (Dropout -> identity in eval). bf16 MXU feed, f32 accumulate.
    h1 = jnp.dot(x, w1_ref[...], preferred_element_type=jnp.float32) + b1_ref[...]
    h1 = jnp.maximum(h1, 0.0)

    # Linear 2 + ReLU  (Dropout -> identity in eval)
    h2 = jnp.dot(h1.astype(w2_ref.dtype), w2_ref[...],
                 preferred_element_type=jnp.float32) + b2_ref[...]
    h2 = jnp.maximum(h2, 0.0)

    # Linear 3 -> logits (padded output columns carry bias -1e30)
    logits = jnp.dot(h2.astype(w3_ref.dtype), w3_ref[...],
                     preferred_element_type=jnp.float32) + b3_ref[...]

    # log_softmax along dim=1 (numerically stable, f32); padded columns contribute exp()==0.
    m = jnp.max(logits, axis=-1, keepdims=True)
    shifted = logits - m
    lse = jnp.log(jnp.sum(jnp.exp(shifted), axis=-1, keepdims=True))
    o_ref[...] = (shifted - lse).astype(o_ref.dtype)


def prepare_params(params):
    """Pad hidden/output dims to 128 lanes; cast weights to bf16, keep biases f32."""
    w1, b1, w2, b2, w3, b3 = params
    H = w1.shape[1]
    Hp = _round_up(H, LANE)
    Np = _round_up(NUM_CLASSES, LANE)

    w1p = jnp.zeros((IN_DIM, Hp), jnp.float32).at[:, :H].set(w1)
    b1p = jnp.zeros((1, Hp), jnp.float32).at[:, :H].set(b1)          # padded units: bias 0
    w2p = jnp.zeros((Hp, Hp), jnp.float32).at[:H, :H].set(w2)
    b2p = jnp.zeros((1, Hp), jnp.float32).at[:, :H].set(b2)
    w3p = jnp.zeros((Hp, Np), jnp.float32).at[:H, :NUM_CLASSES].set(w3)
    b3p = jnp.full((1, Np), NEG_BIG, jnp.float32).at[:, :NUM_CLASSES].set(b3)

    return (w1p.astype(jnp.bfloat16), b1p,
            w2p.astype(jnp.bfloat16), b2p,
            w3p.astype(jnp.bfloat16), b3p)


def mnist_mlp_forward(x_nchw, params, *, tb_max=2048):
    """x_nchw: (B, 1, 28, 28) float32. Returns (B, 10) log-probabilities (bf16)."""
    w1, b1, w2, b2, w3, b3 = prepare_params(params)
    Hp = w1.shape[1]
    Np = w3.shape[1]

    B = x_nchw.shape[0]
    # nn.Flatten only — no wrapper-side cast or pad (cast fused in kernel; ragged last
    # batch block handled by the pl.cdiv grid, OOB output rows are discarded).
    x_flat = x_nchw.reshape(B, -1)

    # Batch tile: multiple of 16 (bf16 output sublane packing), capped at tb_max,
    # and chosen so that B large enough => >=2 grid steps (feeds both v7x TCs).
    TB = min(tb_max, _round_up(pl.cdiv(B, 2), 16))
    TB = max(TB, 16)
    grid = (pl.cdiv(B, TB),)

    const2 = lambda i: (0, 0)   # weights/biases stay resident across batch tiles

    in_specs = [
        pl.BlockSpec((TB, IN_DIM), lambda i: (i, 0)),
        pl.BlockSpec(w1.shape, const2),
        pl.BlockSpec(b1.shape, const2),
        pl.BlockSpec(w2.shape, const2),
        pl.BlockSpec(b2.shape, const2),
        pl.BlockSpec(w3.shape, const2),
        pl.BlockSpec(b3.shape, const2),
    ]
    out_specs = pl.BlockSpec((TB, Np), lambda i: (i, 0))   # lane-dense (128-wide) store
    out_shape = jax.ShapeDtypeStruct((B, Np), jnp.bfloat16)

    flops = 2 * B * (IN_DIM * Hp + Hp * Hp + Hp * Np)
    bytes_accessed = (x_flat.size * 4                      # f32 input stream
                      + (w1.size + w2.size + w3.size) * 2  # bf16 weights (once)
                      + (b1.size + b2.size + b3.size) * 4
                      + B * Np * 2)                        # bf16 output stream
    cost = pl.CostEstimate(flops=flops,
                           transcendentals=B * Np,
                           bytes_accessed=bytes_accessed)

    fn = pl.pallas_call(
        mlp_logsoftmax_kernel,
        out_shape=out_shape,
        grid=grid,
        in_specs=in_specs,
        out_specs=out_specs,
        compiler_params=pltpu.CompilerParams(
            dimension_semantics=("parallel",),
            vmem_limit_bytes=48 << 20,   # don't let v5e's 16 MiB scoped default cap TB
        ),
        cost_estimate=cost,
    )
    out = fn(x_flat, w1, b1, w2, b2, w3, b3)
    return out[:, :NUM_CLASSES]


def init_params(hidden_size: int, key):
    """Deterministic init mirroring the PyTorch module's parameter shapes.
    PyTorch Linear has weight (out, in); we store (in, out) for x @ W."""
    k1, k2, k3, k4, k5, k6 = jax.random.split(key, 6)

    def uniform(k, shape, fan_in):
        bound = 1.0 / jnp.sqrt(fan_in)
        return jax.random.uniform(k, shape, jnp.float32, -bound, bound)

    w1 = uniform(k1, (IN_DIM, hidden_size), IN_DIM)
    b1 = uniform(k2, (1, hidden_size), IN_DIM)
    w2 = uniform(k3, (hidden_size, hidden_size), hidden_size)
    b2 = uniform(k4, (1, hidden_size), hidden_size)
    w3 = uniform(k5, (hidden_size, 10), hidden_size)
    b3 = uniform(k6, (1, 10), hidden_size)
    return (w1, b1, w2, b2, w3, b3)


if __name__ == "__main__":
    key = jax.random.PRNGKey(0)
    k_x, k_p = jax.random.split(key)

    batch = 2
    hidden_size = 32
    x = jax.random.normal(k_x, (batch, 1, 28, 28), dtype=jnp.float32)
    params = init_params(hidden_size, k_p)

    out = mnist_mlp_forward(x, params)
    out = jax.block_until_ready(out)

    assert out.shape == (batch, 10)
    # log-probs must exponentiate to a proper distribution per row (bf16 store -> loose tol)
    assert jnp.allclose(jnp.sum(jnp.exp(out.astype(jnp.float32)), axis=1), 1.0, atol=2e-2)

    # pure-JAX f32 reference (kernel uses bf16 weights/input and bf16 output -> small tolerance)
    w1, b1, w2, b2, w3, b3 = params
    xf = x.reshape(batch, -1)
    h1 = jnp.maximum(xf @ w1 + b1, 0.0)
    h2 = jnp.maximum(h1 @ w2 + b2, 0.0)
    ref = jax.nn.log_softmax(h2 @ w3 + b3, axis=-1)
    err = float(jnp.max(jnp.abs(out.astype(jnp.float32) - ref)))
    assert err < 6e-2, err

    print("KERNEL_OK")
</pallas_src>

<mosaic_0001>
module attributes {stable_mosaic.version = 11 : i64} {
  func.func @mlp_logsoftmax_kernel(%arg0: i32, %arg1: memref<16x784xf32, #tpu.memory_space<vmem>>, %arg2: memref<784x128xbf16, #tpu.memory_space<vmem>>, %arg3: memref<1x128xf32, #tpu.memory_space<vmem>>, %arg4: memref<128x128xbf16, #tpu.memory_space<vmem>>, %arg5: memref<1x128xf32, #tpu.memory_space<vmem>>, %arg6: memref<128x128xbf16, #tpu.memory_space<vmem>>, %arg7: memref<1x128xf32, #tpu.memory_space<vmem>>, %arg8: memref<16x128xbf16, #tpu.memory_space<vmem>>) attributes {dimension_semantics = [#tpu.dimension_semantics<parallel>], iteration_bounds = array<i64: 1>, scalar_prefetch = 0 : i64, scratch_operands = 0 : i64, tpu.core_type = #tpu.core_type<tc>, window_params = [{transform_indices = @transform_0, window_bounds = array<i64: 16, 784>}, {pipeline_mode = #tpu.pipeline_mode<synchronous>, transform_indices = @transform_1, window_bounds = array<i64: 784, 128>}, {pipeline_mode = #tpu.pipeline_mode<synchronous>, transform_indices = @transform_2, window_bounds = array<i64: 1, 128>}, {pipeline_mode = #tpu.pipeline_mode<synchronous>, transform_indices = @transform_3, window_bounds = array<i64: 128, 128>}, {pipeline_mode = #tpu.pipeline_mode<synchronous>, transform_indices = @transform_4, window_bounds = array<i64: 1, 128>}, {pipeline_mode = #tpu.pipeline_mode<synchronous>, transform_indices = @transform_5, window_bounds = array<i64: 128, 128>}, {pipeline_mode = #tpu.pipeline_mode<synchronous>, transform_indices = @transform_6, window_bounds = array<i64: 1, 128>}, {transform_indices = @transform_7, window_bounds = array<i64: 16, 128>}]} {
    %c0 = arith.constant 0 : index
    %c0_0 = arith.constant 0 : index
    %0 = vector.load %arg1[%c0, %c0_0] : memref<16x784xf32, #tpu.memory_space<vmem>>, vector<16x784xf32>
    %1 = arith.truncf %0 : vector<16x784xf32> to vector<16x784xbf16>
    %c0_1 = arith.constant 0 : index
    %c0_2 = arith.constant 0 : index
    %2 = vector.load %arg2[%c0_1, %c0_2] : memref<784x128xbf16, #tpu.memory_space<vmem>>, vector<784x128xbf16>
    %cst = arith.constant dense<0.000000e+00> : vector<16x128xf32>
    %3 = tpu.matmul %1, %2, %cst {dimension_numbers = #tpu.dot_dimension_numbers<[1], [0], [0], [1], [0, 0, 1, 1], [], []>} : vector<16x784xbf16>, vector<784x128xbf16>, vector<16x128xf32> -> vector<16x128xf32>
    %c0_3 = arith.constant 0 : index
    %c0_4 = arith.constant 0 : index
    %4 = vector.load %arg3[%c0_3, %c0_4] : memref<1x128xf32, #tpu.memory_space<vmem>>, vector<1x128xf32>
    %5 = vector.broadcast %4 : vector<1x128xf32> to vector<16x128xf32>
    %6 = arith.addf %3, %5 : vector<16x128xf32>
    %cst_5 = arith.constant 0.000000e+00 : f32
    %7 = vector.broadcast %cst_5 : f32 to vector<16x128xf32>
    %8 = arith.maximumf %6, %7 : vector<16x128xf32>
    %9 = arith.truncf %8 : vector<16x128xf32> to vector<16x128xbf16>
    %c0_6 = arith.constant 0 : index
    %c0_7 = arith.constant 0 : index
    %10 = vector.load %arg4[%c0_6, %c0_7] : memref<128x128xbf16, #tpu.memory_space<vmem>>, vector<128x128xbf16>
    %cst_8 = arith.constant dense<0.000000e+00> : vector<16x128xf32>
    %11 = tpu.matmul %9, %10, %cst_8 {dimension_numbers = #tpu.dot_dimension_numbers<[1], [0], [0], [1], [0, 0, 1, 1], [], []>} : vector<16x128xbf16>, vector<128x128xbf16>, vector<16x128xf32> -> vector<16x128xf32>
    %c0_9 = arith.constant 0 : index
    %c0_10 = arith.constant 0 : index
    %12 = vector.load %arg5[%c0_9, %c0_10] : memref<1x128xf32, #tpu.memory_space<vmem>>, vector<1x128xf32>
    %13 = vector.broadcast %12 : vector<1x128xf32> to vector<16x128xf32>
    %14 = arith.addf %11, %13 : vector<16x128xf32>
    %cst_11 = arith.constant 0.000000e+00 : f32
    %15 = vector.broadcast %cst_11 : f32 to vector<16x128xf32>
    %16 = arith.maximumf %14, %15 : vector<16x128xf32>
    %17 = arith.truncf %16 : vector<16x128xf32> to vector<16x128xbf16>
    %c0_12 = arith.constant 0 : index
    %c0_13 = arith.constant 0 : index
    %18 = vector.load %arg6[%c0_12, %c0_13] : memref<128x128xbf16, #tpu.memory_space<vmem>>, vector<128x128xbf16>
    %cst_14 = arith.constant dense<0.000000e+00> : vector<16x128xf32>
    %19 = tpu.matmul %17, %18, %cst_14 {dimension_numbers = #tpu.dot_dimension_numbers<[1], [0], [0], [1], [0, 0, 1, 1], [], []>} : vector<16x128xbf16>, vector<128x128xbf16>, vector<16x128xf32> -> vector<16x128xf32>
    %c0_15 = arith.constant 0 : index
    %c0_16 = arith.constant 0 : index
    %20 = vector.load %arg7[%c0_15, %c0_16] : memref<1x128xf32, #tpu.memory_space<vmem>>, vector<1x128xf32>
    %21 = vector.broadcast %20 : vector<1x128xf32> to vector<16x128xf32>
    %22 = arith.addf %19, %21 : vector<16x128xf32>
    %cst_17 = arith.constant dense<0xFF800000> : vector<16xf32>
    %23 = vector.multi_reduction <maximumf>, %22, %cst_17 [1] : vector<16x128xf32> to vector<16xf32>
    %24 = vector.shape_cast %23 : vector<16xf32> to vector<16x1xf32>
    %25 = vector.broadcast %24 : vector<16x1xf32> to vector<16x128xf32>
    %26 = arith.subf %22, %25 : vector<16x128xf32>
    %27 = math.exp %26 : vector<16x128xf32>
    %cst_18 = arith.constant dense<0.000000e+00> : vector<16xf32>
    %28 = vector.multi_reduction <add>, %27, %cst_18 [1] : vector<16x128xf32> to vector<16xf32>
    %29 = vector.shape_cast %28 : vector<16xf32> to vector<16x1xf32>
    %30 = math.log %29 : vector<16x1xf32>
    %31 = vector.broadcast %30 : vector<16x1xf32> to vector<16x128xf32>
    %32 = arith.subf %26, %31 : vector<16x128xf32>
    %33 = arith.truncf %32 : vector<16x128xf32> to vector<16x128xbf16>
    %c0_19 = arith.constant 0 : index
    %c0_20 = arith.constant 0 : index
    %34 = vector.load %arg8[%c0_19, %c0_20] : memref<16x128xbf16, #tpu.memory_space<vmem>>, vector<16x128xbf16>
    tpu.vector_store %arg8[%c0_19, %c0_20], %33 {strides = array<i32>} : memref<16x128xbf16, #tpu.memory_space<vmem>>, vector<16x128xbf16>,
    return
  }
  func.func @transform_0(%arg0: i32) -> (i32, i32) {
    %c0_i32 = arith.constant 0 : i32
    %c0_i32_0 = arith.constant 0 : i32
    return %arg0, %c0_i32 : i32, i32
  }
  func.func @transform_1(%arg0: i32) -> (i32, i32) {
    %c0_i32 = arith.constant 0 : i32
    %c0_i32_0 = arith.constant 0 : i32
    %c0_i32_1 = arith.constant 0 : i32
    return %c0_i32, %c0_i32_0 : i32, i32
  }
  func.func @transform_2(%arg0: i32) -> (i32, i32) {
    %c0_i32 = arith.constant 0 : i32
    %c0_i32_0 = arith.constant 0 : i32
    %c0_i32_1 = arith.constant 0 : i32
    return %c0_i32, %c0_i32_0 : i32, i32
  }
  func.func @transform_3(%arg0: i32) -> (i32, i32) {
    %c0_i32 = arith.constant 0 : i32
    %c0_i32_0 = arith.constant 0 : i32
    %c0_i32_1 = arith.constant 0 : i32
    return %c0_i32, %c0_i32_0 : i32, i32
  }
  func.func @transform_4(%arg0: i32) -> (i32, i32) {
    %c0_i32 = arith.constant 0 : i32
    %c0_i32_0 = arith.constant 0 : i32
    %c0_i32_1 = arith.constant 0 : i32
    return %c0_i32, %c0_i32_0 : i32, i32
  }
  func.func @transform_5(%arg0: i32) -> (i32, i32) {
    %c0_i32 = arith.constant 0 : i32
    %c0_i32_0 = arith.constant 0 : i32
    %c0_i32_1 = arith.constant 0 : i32
    return %c0_i32, %c0_i32_0 : i32, i32
  }
  func.func @transform_6(%arg0: i32) -> (i32, i32) {
    %c0_i32 = arith.constant 0 : i32
    %c0_i32_0 = arith.constant 0 : i32
    %c0_i32_1 = arith.constant 0 : i32
    return %c0_i32, %c0_i32_0 : i32, i32
  }
  func.func @transform_7(%arg0: i32) -> (i32, i32) {
    %c0_i32 = arith.constant 0 : i32
    %c0_i32_0 = arith.constant 0 : i32
    return %arg0, %c0_i32 : i32, i32
  }
}

</mosaic_0001>

<bundles_post_ra>
// kernel: tpu_custom_call.1
= control target key start
LH: loop header
LB: loop body
LE: loop exit
PB: predicated region body
PF: predicated region fallthrough
CT: control target
= control target key end

     0   :  { %12 = vsyncpa [#allocation3], 0  ;;  %s1741_s0 = inlined_call_operand.hbm [shape: f32[2,784], index: 0, kind: input, shape index: {}]   ;;  %s1742_s1 = inlined_call_operand.hbm [shape: bf16[784,128], index: 1, kind: input, shape index: {}]   ;;  %s1743_s2 = inlined_call_operand.vmem [shape: f32[1,128], index: 2, kind: input, shape index: {}]   ;;  %s1744_s3 = inlined_call_operand.hbm [shape: bf16[128,128], index: 3, kind: input, shape index: {}]   ;;  %s1745_s4 = inlined_call_operand.vmem [shape: f32[1,128], index: 4, kind: input, shape index: {}]   ;;  %s1746_s5 = inlined_call_operand.hbm [shape: bf16[128,128], index: 5, kind: input, shape index: {}]   ;;  %s1747_s6 = inlined_call_operand.vmem [shape: f32[1,128], index: 6, kind: input, shape index: {}]   ;;  %s1748_s7 = inlined_call_operand.hbm [shape: bf16[2,128], index: 7, kind: output, shape index: {}]  }
   0x1   :  { %13 = vsyncpa [#allocation6], 0 }
   0x2   :  { %14 = vsyncpa [#allocation9], 0 }
   0x3   :  { %15 = vsyncpa [#allocation4], 0 }
   0x4   :  { %20 = vsyncadd [#allocation3], 1568  ;;  %s1607_s24 = smov [#allocation5]  }
   0x5   :  { %s33_s25 = sshll.u32 %s1607_s24, 4  ;;  %s34_s25 = int_to_ptr.vmem [resolvable:$true] %s33_s25 }
   0x6   :  { %s1507_s26 = scalar_lea.vmem %s34_s25, 6272  ;;  %p1512_p1 = scmp.lt.s32.totalorder %s34_s25, %s34_s25 }
   0x7   :  { %p1508_p0 = scmp.ne.s32.totalorder %s34_s25, %s1507_s26  ;;  %p1513_p2 = scmp.lt.s32.totalorder %s1507_s26, %s1507_s26 }
   0x9   :  { %p1514_p3 = por %p1513_p2, %p1512_p1 }
   0xb   :  { %p1515_p4 = pnand %p1514_p3, %p1508_p0 }
   0xd   :  { %1518 = shalt.err (!%p1515_p4)
}
   0xe   :  { %s1608_s27 = smov 64   ;;  %s1609_s28 = smov 4  }
   0xf   :  { %39 = dma.hbm_to_vmem [thread:$0]  %s1742_s1, 6272, %s34_s25, [#allocation6], %s1608_s27, %s1608_s27, %s1609_s28  }
  0x10   :  { %s1610_s8 = smov [#allocation2]  }
  0x11   :  { %s21_s9 = sshll.u32 %s1610_s8, 4  ;;  %s22_s9 = int_to_ptr.vmem [resolvable:$true] %s21_s9 }
  0x12   :  { %s1527_s10 = scalar_lea.vmem %s22_s9, 224  ;;  %s1531_s11 = scalar_lea.vmem %s22_s9, 1792 }
  0x13   :  { %p1528_p5 = scmp.ne.s32.totalorder %s22_s9, %s1527_s10  ;;  %p1532_p6 = scmp.lt.s32.totalorder %s22_s9, %s22_s9 }
  0x14   :  { %p1533_p7 = scmp.lt.s32.totalorder %s1531_s11, %s1527_s10 }
  0x16   :  { %p1534_p8 = por %p1533_p7, %p1532_p6 }
  0x18   :  { %p1535_p9 = pnand %p1534_p8, %p1528_p5 }
  0x1a   :  { %1538 = shalt.err (!%p1535_p9)
}
  0x1b   :  { %s1611_s12 = smov 224   ;;  %s1612_s13 = smov 14  }
  0x1c   :  { %27 = dma.hbm_to_vmem [thread:$0]  %s1741_s0, 224, %s22_s9, [#allocation3], %s1611_s12, %s1611_s12, %s1612_s13  }
  0x1d   :  { %s1613_s16 = smov [#allocation7]   ;;  %s1614_s1 = smov [#allocation8]  }
  0x1e   :  { %s47_s17 = sshll.u32 %s1613_s16, 4  ;;  %s61_s18 = sshll.u32 %s1614_s1, 4  ;;  %s48_s17 = int_to_ptr.vmem [resolvable:$true] %s47_s17  ;;  %s62_s18 = int_to_ptr.vmem [resolvable:$true] %s61_s18 }
  0x1f   :  { %s1547_s19 = scalar_lea.vmem %s48_s17, 1024  ;;  %p1552_p11 = scmp.lt.s32.totalorder %s48_s17, %s48_s17 }
  0x20   :  { %p1548_p10 = scmp.ne.s32.totalorder %s48_s17, %s1547_s19  ;;  %p1553_p12 = scmp.lt.s32.totalorder %s1547_s19, %s1547_s19 }
  0x22   :  { %p1554_p13 = por %p1553_p12, %p1552_p11 }
  0x24   :  { %p1555_p0 = pnand %p1554_p13, %p1548_p10 }
  0x26   :  { %1558 = shalt.err (!%p1555_p0)
}
  0x27   :  { %53 = dma.hbm_to_vmem [thread:$0]  %s1744_s3, 1024, %s48_s17, [#allocation6], %s1608_s27, %s1608_s27, %s1609_s28  }
  0x28   :  { %s1567_s0 = scalar_lea.vmem %s62_s18, 1024  ;;  %p1572_p2 = scmp.lt.s32.totalorder %s62_s18, %s62_s18 }
  0x29   :  { %p1568_p1 = scmp.ne.s32.totalorder %s62_s18, %s1567_s0  ;;  %p1573_p3 = scmp.lt.s32.totalorder %s1567_s0, %s1567_s0 }
  0x2b   :  { %p1574_p4 = por %p1573_p3, %p1572_p2 }
  0x2d   :  { %p1575_p5 = pnand %p1574_p4, %p1568_p1 }
  0x2f   :  { %1578 = shalt.err (!%p1575_p5)
}
  0x30   :  { %67 = dma.hbm_to_vmem [thread:$0]  %s1746_s5, 1024, %s62_s18, [#allocation9], %s1608_s27, %s1608_s27, %s1609_s28  }
  0x31   :  { %1599 = dma.done.wait [#allocation3], 1792  }
  0x32   :  { %1600 = vsyncadd [#allocation3], 4294965504 }
  0x33   :  { %1601 = dma.done.wait [#allocation6], 7296  }
  0x34   :  { %1602 = vsyncadd [#allocation6], 4294960000 }
  0x35   :  { %1603 = dma.done.wait [#allocation9], 1024  }
  0x36   :  { %1604 = vsyncadd [#allocation9], 4294966272  ;;  %v1402_v0 = vld [vmem:[#allocation5 + $0x78] sm:$0xff]   ;;  %v1406_v4 = vld [vmem:[#allocation5 + $0x70] sm:$0xff]   ;;  %v1615_v24 = vmov 1983009808   ;;  %v122_v26 = vlaneseq }
  0x37   :  { %v1403_v1 = vld [vmem:[#allocation5 + $0x38] sm:$0xff]   ;;  %1255 = vmatprep.subr.bf16.mxu0 %v1402_v0  ;;  %v1407_v5 = vld [vmem:[#allocation5 + $0x30] sm:$0xff]   ;;  %v1410_v8 = vld [vmem:[#allocation5 + $0x68] sm:$0xff]   ;;  %v120_v25 = vunpack.c.l.s4 %v1615_v24  ;;  %v1616_v58 = vmov 0.0   ;;  %vm1617_vm0 = vmmov 0   ;;  %vm677_vm1 = vcmask 130048  }
  0x38   :  { %v1404_v2 = vld [vmem:[#allocation5 + $0xf8] sm:$0xff]   ;;  %1256 = vmatpush3.bf16.msra.mxu0 %v1403_v1  ;;  %v1408_v6 = vld [vmem:[#allocation5 + $0xf0] sm:$0xff]   ;;  %v1411_v9 = vld [vmem:[#allocation5 + $0x28] sm:$0xff]   ;;  %v1683_v32 = vshrl.u32 %v122_v26, 7 }
  0x39   :  { %v1405_v3 = vld [vmem:[#allocation5 + $0xb8] sm:$0xff]   ;;  %1277 = vmatprep.subr.bf16.mxu1 %v1404_v2  ;;  %1257 = vmatprep.subr.bf16.mxu0 %v1406_v4  ;;  %v1409_v7 = vld [vmem:[#allocation5 + $0xb0] sm:$0xff]   ;;  %v1412_v10 = vld [vmem:[#allocation5 + $0xe8] sm:$0xff]   ;;  %v121_v31 = vunpack.c.0.s8 %v120_v25 }
  0x3a   :  { %1278 = vmatpush3.bf16.msra.mxu1 %v1405_v3  ;;  %v1413_v11 = vld [vmem:[#allocation5 + $0xa8] sm:$0xff]   ;;  %v1414_v12 = vld [vmem:[#allocation5 + $0x60] sm:$0xff]   ;;  %v1418_v16 = vld [vmem:[#allocation5 + $0x58] sm:$0xff]  }
  0x3b   :  { %1279 = vmatprep.subr.bf16.mxu1 %v1408_v6  ;;  %v1415_v13 = vld [vmem:[#allocation5 + $0x20] sm:$0xff]   ;;  %v1419_v17 = vld [vmem:[#allocation5 + $0x18] sm:$0xff]   ;;  %v1422_v20 = vld [vmem:[#allocation5 + $0x50] sm:$0xff]   ;;  %v1686_v36 = vsub.s32 %v121_v31, %v1683_v32 }
  0x3c   :  { %1258 = vmatpush3.bf16.msra.mxu0 %v1407_v5  ;;  %v1416_v14 = vld [vmem:[#allocation5 + $0xe0] sm:$0xff]   ;;  %v1420_v18 = vld [vmem:[#allocation5 + $0xd8] sm:$0xff]   ;;  %v1423_v21 = vld [vmem:[#allocation5 + $0x10] sm:$0xff]  }
  0x3d   :  { %1259 = vmatprep.subr.bf16.mxu0 %v1410_v8  ;;  %v1417_v15 = vld [vmem:[#allocation5 + $0xa0] sm:$0xff]   ;;  %v1421_v19 = vld [vmem:[#allocation5 + $0x98] sm:$0xff]   ;;  %v1424_v22 = vld [vmem:[#allocation5 + $0xd0] sm:$0xff]  }
  0x3e   :  { %1280 = vmatpush3.bf16.msra.mxu1 %v1409_v7  ;;  %v1425_v23 = vld [vmem:[#allocation5 + $0x90] sm:$0xff]   ;;  %v1426_v27 = vld [vmem:[#allocation5 + $0x48] sm:$0xff]   ;;  %v1430_v33 = vld [vmem:[#allocation5 + $0x40] sm:$0xff]  }
  0x3f   :  { %1281 = vmatprep.subr.bf16.mxu1 %v1412_v10  ;;  %v1427_v28 = vld [vmem:[#allocation5 + $0x8] sm:$0xff]   ;;  %v1431_v34 = vld [vmem:[#allocation5] sm:$0xff]   ;;  %v1442_v46 = vld [vmem:[#allocation5 + $0x178] sm:$0xff]  }
  0x40   :  { %1260 = vmatpush3.bf16.msra.mxu0 %v1411_v9  ;;  %v1428_v29 = vld [vmem:[#allocation5 + $0xc8] sm:$0xff]   ;;  %v1432_v35 = vld [vmem:[#allocation5 + $0xc0] sm:$0xff]   ;;  %v1447_v62 = vld [vmem:[#allocation5 + $0x138] sm:$0xff]  }
  0x41   :  { %1261 = vmatprep.subr.bf16.mxu0 %v1414_v12  ;;  %v1429_v30 = vld [vmem:[#allocation5 + $0x88] sm:$0xff]   ;;  %v1433_v37 = vld [vmem:[#allocation2] ss:$14 sps:$4 sm:$0xff]   ;;  %v1443_v47 = vld [vmem:[#allocation2 + $0x4] ss:$14 sps:$4 sm:$0xff]  }
  0x42   :  { %1282 = vmatpush3.bf16.msra.mxu1 %v1413_v11  ;;  %v1435_v38 = vld [vmem:[#allocation2 + $0x1c] ss:$14 sps:$4 sm:$0xff]   ;;  %v1437_v39 = vld [vmem:[#allocation2 + $0x38] ss:$14 sps:$4 sm:$0xff]   ;;  %v1439_v40 = vld [vmem:[#allocation2 + $0x54] ss:$14 sps:$4 sm:$0xff]   ;;  %v125_v41 = vrot.slane %v1433_v37, %v1686_v36  ;;  %v132_v55 = vrot.slane %v1443_v47, %v1686_v36 }
  0x43   :  { %1283 = vmatprep.subr.bf16.mxu1 %v1416_v14  ;;  %v1441_v42 = vld [vmem:[#allocation5 + $0x80] sm:$0xff]   ;;  %v139_v43 = vrot.slane %v1435_v38, %v1686_v36  ;;  %v196_v44 = vrot.slane %v1437_v39, %v1686_v36  ;;  %v210_v45 = vrot.slane %v1439_v40, %v1686_v36  ;;  %v1445_v49 = vld [vmem:[#allocation2 + $0x3c] ss:$14 sps:$4 sm:$0xff]   ;;  %v1446_v54 = vld [vmem:[#allocation2 + $0x58] ss:$14 sps:$4 sm:$0xff]  }
  0x44   :  { %1262 = vmatpush3.bf16.msra.mxu0 %v1415_v13  ;;  %v1444_v48 = vld [vmem:[#allocation2 + $0x20] ss:$14 sps:$4 sm:$0xff]   ;;  %v203_v57 = vrot.slane %v1445_v49, %v1686_v36  ;;  %v217_v61 = vrot.slane %v1446_v54, %v1686_v36  ;;  %v1450_v7 = vld [vmem:[#allocation5 + $0x168] sm:$0xff]  }
  0x45   :  { %1263 = vmatprep.subr.bf16.mxu0 %v1418_v16  ;;  %v148_v50 = vcombine.high %v125_v41, %v139_v43  ;;  %v219_v51 = vcombine.high %v196_v44, %v210_v45  ;;  %v147_v52 = vcombine.low %v125_v41, %v139_v43  ;;  %v218_v53 = vcombine.low %v196_v44, %v210_v45  ;;  %v1448_v1 = vld [vmem:[#allocation5 + $0x170] sm:$0xff]   ;;  %v1451_v8 = vld [vmem:[#allocation5 + $0x128] sm:$0xff]   ;;  %v1452_v9 = vld [vmem:[#allocation5 + $0x160] sm:$0xff]  }
  0x46   :  { %1284 = vmatpush3.bf16.msra.mxu1 %v1417_v15  ;;  %v146_v56 = vrot.slane %v1444_v48, %v1686_v36  ;;  %v221_v2 = vcombine.high %v203_v57, %v217_v61  ;;  %v220_v3 = vcombine.low %v203_v57, %v217_v61  ;;  %v1449_v6 = vld [vmem:[#allocation5 + $0x130] sm:$0xff]   ;;  %v1453_v10 = vld [vmem:[#allocation5 + $0x120] sm:$0xff]   ;;  %v1454_v11 = vld [vmem:[#allocation5 + $0x158] sm:$0xff]  }
  0x47   :  { %1285 = vmatprep.subr.bf16.mxu1 %v1420_v18  ;;  %v272_v59 = vpack.c.bf16 %v219_v51, %v148_v50  ;;  %v271_v60 = vpack.c.bf16 %v218_v53, %v147_v52  ;;  %v1455_v12 = vld [vmem:[#allocation5 + $0x118] sm:$0xff]   ;;  %v1462_v13 = vld [vmem:[#allocation5 + $0x180] sm:$0xff]   ;;  %v1456_v14 = vld [vmem:[#allocation5 + $0x150] sm:$0xff]  }
  0x48   :  { %1264 = vmatpush3.bf16.msra.mxu0 %v1419_v17  ;;  %v150_v63 = vcombine.high %v132_v55, %v146_v56  ;;  %v149_v0 = vcombine.low %v132_v55, %v146_v56  ;;  %v1463_v15 = vld [vmem:[#allocation2 + $0x8] ss:$14 sps:$4 sm:$0xff]   ;;  %v1465_v16 = vld [vmem:[#allocation2 + $0xc] ss:$14 sps:$4 sm:$0x33]   ;;  %v1477_v48 = vld [vmem:[#allocation7 + $0x28] sm:$0xff]  }
  0x49   :  { %1265 = vmatprep.subr.bf16.mxu0 %v1422_v20  ;;  %713 = vmatprep.mubr.bf16.mxu0 %v272_v59  ;;  %v1466_v17 = vld [vmem:[#allocation2 + $0x24] ss:$14 sps:$4 sm:$0xff]   ;;  %v1468_v18 = vld [vmem:[#allocation2 + $0x28] ss:$14 sps:$4 sm:$0x33]   ;;  %v161_v20 = vrot.slane %v1463_v15, %v1686_v36  ;;  %v1458_v24 = vld [vmem:[#allocation5 + $0x148] sm:$0xff]  }
  0x4a   :  { %1286 = vmatpush3.bf16.msra.mxu1 %v1421_v19  ;;  %v274_v4 = vpack.c.bf16 %v221_v2, %v150_v63  ;;  %v273_v5 = vpack.c.bf16 %v220_v3, %v149_v0  ;;  %v1457_v19 = vld [vmem:[#allocation5 + $0x110] sm:$0xff]   ;;  %v175_v25 = vrot.slane %v1466_v17, %v1686_v36  ;;  %v182_v26 = vrot.slane %v1468_v18, %v1686_v36  ;;  %v1459_v31 = vld [vmem:[#allocation5 + $0x108] sm:$0xff]   ;;  %v1460_v37 = vld [vmem:[#allocation5 + $0x140] sm:$0xff]  }
  0x4b   :  { %1287 = vmatprep.subr.bf16.mxu1 %v1424_v22  ;;  %v1469_v22 = vld [vmem:[#allocation2 + $0x40] ss:$14 sps:$4 sm:$0xff]   ;;  %v1478_v49 = vld [vmem:[#allocation7 + $0x20] sm:$0xff]  }
  0x4c   :  { %1266 = vmatpush3.bf16.msra.mxu0 %v1423_v21  ;;  %754 = vmatprep.mubr.bf16.mxu1 %v274_v4  ;;  %v168_v21 = vrot.slane %v1465_v16, %v1686_v36  ;;  %v1461_v41 = vld [vmem:[#allocation5 + $0x100] sm:$0xff]   ;;  %v183_v44 = vcombine.low %v161_v20, %v175_v25  ;;  %v1476_v47 = vld [vmem:[#allocation7 + $0x30] sm:$0xff]   ;;  %v1481_v52 = vld [vmem:[#allocation7 + $0x8] sm:$0xff]  }
  0x4d   :  { %1267 = vmatprep.subr.bf16.mxu0 %v1426_v27  ;;  %v1472_v27 = vld [vmem:[#allocation2 + $0x5c] ss:$14 sps:$4 sm:$0xff]   ;;  %v1479_v50 = vld [vmem:[#allocation7 + $0x18] sm:$0xff]   ;;  %v1485_v56 = vld [vmem:[#allocation8 + $0x28] sm:$0xff]  }
  0x4e   :  { %1288 = vmatpush3.bf16.msra.mxu1 %v1425_v23  ;;  %v1471_v23 = vld [vmem:[#allocation2 + $0x44] ss:$14 sps:$4 sm:$0x33]   ;;  %v185_v38 = vcombine.low %v168_v21, %v182_v26  ;;  %v1480_v51 = vld [vmem:[#allocation7 + $0x10] sm:$0xff]   ;;  %v1482_v53 = vld [vmem:[#allocation7] sm:$0xff]  }
  0x4f   :  { %1289 = vmatprep.subr.bf16.mxu1 %v1428_v29  ;;  %v232_v29 = vrot.slane %v1469_v22, %v1686_v36  ;;  %v1483_v54 = vld [vmem:[#allocation8 + $0x38] sm:$0xff]   ;;  %v1484_v55 = vld [vmem:[#allocation8 + $0x30] sm:$0xff]   ;;  %v1486_v57 = vld [vmem:[#allocation8 + $0x20] sm:$0xff]  }
  0x50   :  { %1268 = vmatpush3.bf16.msra.mxu0 %v1427_v28  ;;  %v1474_v28 = vld [vmem:[#allocation2 + $0x60] ss:$14 sps:$4 sm:$0x33]   ;;  %v1487_v59 = vld [vmem:[#allocation8 + $0x18] sm:$0xff]  }
  0x51   :  { %1269 = vmatprep.subr.bf16.mxu0 %v1430_v33  ;;  %v184_v33 = vcombine.high %v161_v20, %v175_v25 }
  0x52   :  { %1290 = vmatpush3.bf16.msra.mxu1 %v1429_v30  ;;  %v239_v30 = vrot.slane %v1471_v23, %v1686_v36 }
  0x53   :  { %1291 = vmatprep.subr.bf16.mxu1 %v1432_v35  ;;  %v253_v35 = vrot.slane %v1474_v28, %v1686_v36 }
  0x54   :  { %1270 = vmatpush3.bf16.msra.mxu0 %v1431_v34  ;;  %v246_v34 = vrot.slane %v1472_v27, %v1686_v36 }
  0x55   :  { %1299 = vmatprep.subr.bf16.mxu0 %v1442_v46  ;;  %v256_v40 = vcombine.low %v239_v30, %v253_v35  ;;  %v1475_v46 = vld [vmem:[#allocation7 + $0x38] sm:$0xff]   ;;  %v1488_v30 = vld [vmem:[#allocation8 + $0x10] sm:$0xff]  }
  0x56   :  { %1292 = vmatpush3.bf16.msra.mxu1 %v1441_v42  ;;  %v255_v39 = vcombine.high %v232_v29, %v246_v34  ;;  %v254_v45 = vcombine.low %v232_v29, %v246_v34  ;;  %v1232_v34 = vld [vmem:[%s1745_s4] ss:$0 sm:$0xff] }
  0x57   :  { %1341 = vmatprep.subr.bf16.mxu1 %v1616_v58  ;;  %714 = vmatmul.mubr.bf16.vlgmr.msra.gmra.mxu0 %v271_v60  ;;  %v277_v43 = vpack.c.bf16 %v256_v40, %v185_v38 }
  0x58   :  { %1300 = vmatpush3.bf16.msra.mxu0 %v1447_v62  ;;  %v276_v42 = vpack.c.bf16 %v255_v39, %v184_v33  ;;  %v275_v36 = vpack.c.bf16 %v254_v45, %v183_v44  ;;  %v1490_v33 = vld [vmem:[#allocation8] sm:$0xff]  }
  0x59   :  { %1301 = vmatprep.subr.bf16.mxu0 %v1448_v1  ;;  %755 = vmatmul.mubr.bf16.vlgmr.msra.gmra.mxu1 %v273_v5  ;;  %v1181_v5 = vld [vmem:[%s1743_s2] ss:$0 sm:$0xff] }
  0x5a   :  { %1343 = vmatprep.mubr.msk.bf16.mxu1 %vm1617_vm0, %v1616_v58  ;;  %1342 = vmatpush3.bf16.msra.mxu1 %v1462_v13 }
  0x5b   :  { %1347 = vmatprep.subr.bf16.mxu1 %v1616_v58  ;;  %795 = vmatprep.mubr.bf16.mxu0 %v276_v42 }
  0x5c   :  { %1302 = vmatpush3.bf16.msra.mxu0 %v1449_v6 }
  0x5d   :  { %1303 = vmatprep.subr.bf16.mxu0 %v1450_v7 }
  0x60   :  { %1304 = vmatpush3.bf16.msra.mxu0 %v1451_v8 }
  0x61   :  { %1305 = vmatprep.subr.bf16.mxu0 %v1452_v9  ;;  %1344 = vmatmul.mubr.msk.bf16.vlgmr.msra.gmra.mxu1 %vm677_vm1, %v277_v43 }
  0x62   :  { %1363 = vmatprep.mubr.msk.bf16.mxu1 %vm1617_vm0, %v1616_v58  ;;  %1348 = vmatpush3.bf16.msra.mxu1 %v1475_v46 }
  0x63   :  { %1349 = vmatprep.subr.bf16.mxu1 %v1616_v58 }
  0x64   :  { %1306 = vmatpush3.bf16.msra.mxu0 %v1453_v10 }
  0x65   :  { %1307 = vmatprep.subr.bf16.mxu0 %v1454_v11 }
  0x66   :  { %1350 = vmatpush3.bf16.msra.mxu1 %v1476_v47 }
  0x67   :  { %1351 = vmatprep.subr.bf16.mxu1 %v1616_v58 }
  0x68   :  { %1308 = vmatpush3.bf16.msra.mxu0 %v1455_v12 }
  0x69   :  { %1309 = vmatprep.subr.bf16.mxu0 %v1456_v14 }
  0x6a   :  { %1352 = vmatpush3.bf16.msra.mxu1 %v1477_v48 }
  0x6b   :  { %1353 = vmatprep.subr.bf16.mxu1 %v1616_v58 }
  0x6c   :  { %1310 = vmatpush3.bf16.msra.mxu0 %v1457_v19 }
  0x6d   :  { %1311 = vmatprep.subr.bf16.mxu0 %v1458_v24 }
  0x6e   :  { %1354 = vmatpush3.bf16.msra.mxu1 %v1478_v49 }
  0x6f   :  { %1355 = vmatprep.subr.bf16.mxu1 %v1616_v58 }
  0x70   :  { %1312 = vmatpush3.bf16.msra.mxu0 %v1459_v31  ;;  %v1489_v31 = vld [vmem:[#allocation8 + $0x8] sm:$0xff]  }
  0x71   :  { %1313 = vmatprep.subr.bf16.mxu0 %v1460_v37 }
  0x72   :  { %1356 = vmatpush3.bf16.msra.mxu1 %v1479_v50 }
  0x73   :  { %1357 = vmatprep.subr.bf16.mxu1 %v1616_v58 }
  0x74   :  { %1314 = vmatpush3.bf16.msra.mxu0 %v1461_v41 }
  0x75   :  { %1367 = vmatprep.subr.bf16.mxu0 %v1616_v58 }
  0x76   :  { %1358 = vmatpush3.bf16.msra.mxu1 %v1480_v51 }
  0x77   :  { %796 = vmatmul.mubr.bf16.vlgmr.msra.gmra.mxu0 %v275_v36  ;;  %1359 = vmatprep.subr.bf16.mxu1 %v1616_v58 }
  0x78   :  { %1383 = vmatprep.mubr.msk.bf16.mxu0 %vm1617_vm0, %v1616_v58  ;;  %1368 = vmatpush3.bf16.msra.mxu0 %v1483_v54 }
  0x79   :  { %1369 = vmatprep.subr.bf16.mxu0 %v1616_v58 }
  0x7a   :  { %1360 = vmatpush3.bf16.msra.mxu1 %v1481_v52 }
  0x7b   :  { %1361 = vmatprep.subr.bf16.mxu1 %v1616_v58 }
  0x7c   :  { %1370 = vmatpush3.bf16.msra.mxu0 %v1484_v55 }
  0x7d   :  { %1371 = vmatprep.subr.bf16.mxu0 %v1616_v58 }
  0x7e   :  { %1362 = vmatpush3.bf16.msra.mxu1 %v1482_v53 }
  0x80   :  { %1372 = vmatpush3.bf16.msra.mxu0 %v1485_v56 }
  0x81   :  { %1373 = vmatprep.subr.bf16.mxu0 %v1616_v58 }
  0x84   :  { %1374 = vmatpush3.bf16.msra.mxu0 %v1486_v57 }
  0x85   :  { %1375 = vmatprep.subr.bf16.mxu0 %v1616_v58 }
  0x88   :  { %1376 = vmatpush3.bf16.msra.mxu0 %v1487_v59 }
  0x89   :  { %1377 = vmatprep.subr.bf16.mxu0 %v1616_v58 }
  0x8c   :  { %1378 = vmatpush3.bf16.msra.mxu0 %v1488_v30 }
  0x8d   :  { %1379 = vmatprep.subr.bf16.mxu0 %v1616_v58 }
  0x90   :  { %1380 = vmatpush3.bf16.msra.mxu0 %v1489_v31 }
  0x91   :  { %1381 = vmatprep.subr.bf16.mxu0 %v1616_v58  ;;  %v1241_v58 = vld [vmem:[%s1747_s6] ss:$0 sm:$0xff] }
  0x94   :  { %1382 = vmatpush3.bf16.msra.mxu0 %v1490_v33 }
 0x117   :  { %v1271_v61 = vpop.f32.mrf.mxu0 }
 0x119   :  { %v1293_v60 = vpop.f32.mrf.mxu1  ;;  %v1272_v63 = vpop.f32.mrf.mxu0 }
 0x11a   :  { %v1273_v4 = vadd.f32 %v1272_v63, %v1271_v61  ;;  %v1618_v61 = vmov 1966171168  }
 0x11b   :  { %v1294_v62 = vpop.f32.mrf.mxu1  ;;  %v1274_v1 = vpop.f32.mrf.mxu0 }
 0x11c   :  { %v716_v9 = vadd.f32 %v1273_v4, %v1181_v5  ;;  %v1295_v10 = vadd.f32 %v1294_v62, %v1293_v60  ;;  %v1099_v62 = vunpack.c.l.s4 %v1618_v61 }
 0x11d   :  { %v1296_v0 = vpop.f32.mrf.mxu1  ;;  %v1275_v6 = vpop.f32.mrf.mxu0 }
 0x11e   :  { %v1276_v11 = vadd.f32 %v1275_v6, %v1274_v1  ;;  %v757_v15 = vadd.f32 %v1295_v10, %v716_v9  ;;  %v1100_v1 = vunpack.c.0.s8 %v1099_v62 }
 0x11f   :  { %v1297_v2 = vpop.f32.mrf.mxu1 }
 0x120   :  { %v719_v16 = vadd.f32 %v1276_v11, %v1181_v5  ;;  %v1298_v17 = vadd.f32 %v1297_v2, %v1296_v0  ;;  %v1103_v5 = vsub.s32 %v1100_v1, %v1683_v32 }
 0x121   :  { %v838_v3 = vpop.f32.mrf.mxu1 }
 0x122   :  { %v760_v22 = vadd.f32 %v1298_v17, %v719_v16 }
 0x123   :  { %v1345_v7 = vpop.f32.mrf.mxu1 }
 0x125   :  { %v841_v8 = vpop.f32.mrf.mxu1 }
 0x127   :  { %v1346_v13 = vpop.f32.mrf.mxu1 }
 0x137   :  { %v1315_v12 = vpop.f32.mrf.mxu0 }
 0x139   :  { %v1316_v14 = vpop.f32.mrf.mxu0 }
 0x13a   :  { %v1317_v18 = vadd.f32 %v1316_v14, %v1315_v12 }
 0x13b   :  { %v1318_v19 = vpop.f32.mrf.mxu0 }
 0x13c   :  { %v798_v20 = vadd.f32 %v1317_v18, %v757_v15 }
 0x13d   :  { %v1319_v21 = vpop.f32.mrf.mxu0 }
 0x13e   :  { %v1320_v23 = vadd.f32 %v1319_v21, %v1318_v19  ;;  %v839_v24 = vadd.f32 %v838_v3, %v798_v20 }
 0x140   :  { %v801_v25 = vadd.f32 %v1320_v23, %v760_v22  ;;  %v845_v27 = vmax.f32 %v839_v24, 0.0 }
 0x142   :  { %v842_v26 = vadd.f32 %v841_v8, %v801_v25 }
 0x144   :  { %v846_v28 = vmax.f32 %v842_v26, 0.0 }
 0x146   :  { %v847_v29 = vpack.c.bf16 %v846_v28, %v845_v27 }
 0x148   :  { %1364 = vmatmul.mubr.bf16.vlgmr.msra.gmra.mxu1 %v847_v29 }
 0x208   :  { %v953_v35 = vpop.f32.mrf.mxu1 }
 0x209   :  { %v954_v38 = vadd.f32 %v1232_v34, %v953_v35 }
 0x20a   :  { %v1365_v37 = vpop.f32.mrf.mxu1 }
 0x20b   :  { %v960_v42 = vmax.f32 %v954_v38, 0.0 }
 0x20c   :  { %v956_v39 = vpop.f32.mrf.mxu1 }
 0x20d   :  { %v957_v40 = vadd.f32 %v1232_v34, %v956_v39 }
 0x20e   :  { %v1366_v41 = vpop.f32.mrf.mxu1 }
 0x20f   :  { %v961_v43 = vmax.f32 %v957_v40, 0.0 }
 0x211   :  { %v962_v44 = vpack.c.bf16 %v961_v43, %v960_v42 }
 0x213   :  { %1384 = vmatmul.mubr.bf16.vlgmr.msra.gmra.mxu0 %v962_v44 }
 0x2d3   :  { %v1068_v45 = vpop.f32.mrf.mxu0 }
 0x2d4   :  { %v1069_v36 = vadd.f32 %v1241_v58, %v1068_v45 }
 0x2d5   :  { %v1385_v46 = vpop.f32.mrf.mxu0 }
 0x2d6   :  { %1075 = vmax.xlane.f32.xlu0 %v1069_v36 }
 0x2d7   :  { %v1071_v47 = vpop.f32.mrf.mxu0 }
 0x2d8   :  { %v1072_v48 = vadd.f32 %v1241_v58, %v1071_v47 }
 0x2d9   :  { %v1386_v49 = vpop.f32.mrf.mxu0 }
 0x2da   :  { %1077 = vmax.xlane.f32.xlu0 %v1072_v48 }
 0x35f   :  { %v1076_v50 = vpop.xlane.xlu0 %1075 }
 0x360   :  { %v1079_v51 = vsub.f32 %v1069_v36, %v1076_v50 }
 0x362   :  { %v1081_v52 = vmul.f32 1.442695, %v1079_v51 }
 0x363   :  { %v1078_v53 = vpop.xlane.xlu0 %1077 }
 0x364   :  { %v1080_v54 = vsub.f32 %v1072_v48, %v1078_v53  ;;  %1491 = vpow2.f32 %v1081_v52 }
 0x366   :  { %v1083_v55 = vmul.f32 1.442695, %v1080_v54 }
 0x368   :  { %1493 = vpow2.f32 %v1083_v55 }
 0x371   :  { %v1492_v56 = vpop.eup %1491 }
 0x372   :  { %1085 = vadd.xlane.f32.xlu1 %v1492_v56 }
 0x375   :  { %v1494_v57 = vpop.eup %1493 }
 0x376   :  { %1087 = vadd.xlane.f32.xlu1 %v1494_v57 }
 0x3fb   :  { %v1086_v59 = vpop.xlane.xlu1 %1085 }
 0x3fc   :  { %1495 = vlog2.f32 %v1086_v59 }
 0x3ff   :  { %v1088_v60 = vpop.xlane.xlu1 %1087 }
 0x400   :  { %1497 = vlog2.f32 %v1088_v60 }
 0x409   :  { %v1496_v63 = vpop.eup %1495 }
 0x40a   :  { %v1090_v0 = vmul.f32 0.6931472, %v1496_v63 }
 0x40c   :  { %v1093_v4 = vsub.f32 %v1079_v51, %v1090_v0 }
 0x40d   :  { %v1498_v2 = vpop.eup %1497 }
 0x40e   :  { %v1092_v3 = vmul.f32 0.6931472, %v1498_v2 }
 0x410   :  { %v1094_v6 = vsub.f32 %v1080_v54, %v1092_v3 }
 0x412   :  { %v1095_v7 = vpack.c.bf16 %v1094_v6, %v1093_v4  ;;  %v1250_v8 = vpack.c.bf16 %v1094_v6, %v1094_v6 }
 0x414   :  { %v1104_v9 = vrot.slane %v1095_v7, %v1103_v5  ;;  %v1111_v10 = vrot.slane %v1250_v8, %v1103_v5 }
 0x416   :  { %v1112_v11 = vcombine.high %v1104_v9, %v1104_v9  ;;  %v1113_v12 = vcombine.high %v1111_v10, %v1111_v10  ;;  %v1120_v13 = vrot.slane %v1104_v9, %v1103_v5  ;;  %v1127_v14 = vrot.slane %v1111_v10, %v1103_v5  ;;  %1251 = vst.sshfl [vmem:[#allocation10] sm:$0x1 pattern:$0x73625140] %v1104_v9 }
 0x417   :  { %1253 = vst.sshfl [vmem:[#allocation10 + $0x4] sm:$0x1 pattern:$0x73625140] %v1111_v10 }
 0x418   :  { %v1134_v15 = vrot.slane %v1112_v11, %v1103_v5  ;;  %v1141_v16 = vrot.slane %v1113_v12, %v1103_v5  ;;  %v1142_v17 = vcombine.high %v1120_v13, %v1120_v13  ;;  %v1143_v18 = vcombine.high %v1127_v14, %v1127_v14  ;;  %1252 = vst.sshfl [vmem:[#allocation10 + $0x1] sm:$0x1 pattern:$0x73625140] %v1112_v11 }
 0x419   :  { %1254 = vst.sshfl [vmem:[#allocation10 + $0x5] sm:$0x1 pattern:$0x73625140] %v1113_v12 }
 0x41a   :  { %v1144_v19 = vcombine.high %v1134_v15, %v1134_v15  ;;  %v1145_v20 = vcombine.high %v1141_v16, %v1141_v16  ;;  %1156 = vst [vmem:[#allocation10 + $0x2] sm:$0x1] %v1142_v17  ;;  %1160 = vst [vmem:[#allocation10 + $0x6] sm:$0x1] %v1143_v18 }
 0x41c   :  { %1157 = vst [vmem:[#allocation10 + $0x3] sm:$0x1] %v1144_v19  ;;  %1161 = vst [vmem:[#allocation10 + $0x7] sm:$0x1] %v1145_v20 }
 0x41d   :  { %1166 = vsyncadd [#allocation4], 112  ;;  %s1619_s4 = smov [#allocation10]  }
 0x41e   :  { %s1167_s6 = sshll.u32 %s1619_s4, 4  ;;  %s1168_s6 = int_to_ptr.vmem [resolvable:$true] %s1167_s6 }
 0x41f   :  { %s1579_s27 = scalar_lea.vmem %s1168_s6, 16  ;;  %s1583_s28 = scalar_lea.vmem %s1168_s6, 128 }
 0x420   :  { %p1580_p6 = scmp.ne.s32.totalorder %s1168_s6, %s1579_s27  ;;  %p1584_p7 = scmp.lt.s32.totalorder %s1168_s6, %s1168_s6 }
 0x421   :  { %p1585_p8 = scmp.lt.s32.totalorder %s1583_s28, %s1579_s27 }
 0x423   :  { %p1586_p9 = por %p1585_p8, %p1584_p7 }
 0x425   :  { %p1587_p10 = pnand %p1586_p9, %p1580_p6 }
 0x427   :  { %1590 = shalt.err (!%p1587_p10)
}
 0x428   :  { %s1620_s29 = smov 16   ;;  %s1621_s30 = smov 1  }
 0x429   :  { %1173 = dma.vmem_to_hbm [thread:$0]  %s1168_s6, 16, %s1748_s7, [#allocation4], %s1620_s29, %s1620_s29, %s1621_s30  }
 0x42a   :  { %1605 = dma.done.wait [#allocation4], 128  }
 0x42b   :  { %1606 = vsyncadd [#allocation4], 4294967168 }
 0x42c   :  { %1177 = vsyncpa [#allocation3], 1 }
 0x42d   :  { %1178 = vsyncpa [#allocation6], 1 }
 0x42e   :  { %1179 = vsyncpa [#allocation9], 1 }
 0x42f   :  { %1180 = vsyncpa [#allocation4], 1 }

</bundles_post_ra>
